<compile_context>
chip_gen: v5e
topology: v5e:2x2
jax: 0.10.0
libtpu: 0.0.40
codegen_flags: <defaults>
</compile_context>

<pallas_src>
import numpy as np
import jax
import jax.numpy as jnp
from jax.experimental import pallas as pl
from jax.experimental.pallas import tpu as pltpu


def _round_up(x, m):
    return ((x + m - 1) // m) * m


def _cdiv(a, b):
    return -(-a // b)


def _vmem_capacity_bytes():
    """Per-TensorCore VMEM capacity; conservative 64 MiB (v7x) fallback."""
    try:
        cap = getattr(pltpu.get_tpu_info(), "vmem_capacity_bytes", None)
        if cap:
            return int(cap)
    except Exception:
        pass
    return 64 * 1024 * 1024


def _edge_encoder_kernel(idx_ref, tab_ref, out_ref):
    # idx_ref : (rows, P*F)  int8/int16/int32 -- packed, offset-pre-added indices
    # tab_ref : (P*D, P*H)   float32          -- block-diagonal concatenated tables
    # out_ref : (rows, P*H)  float32          -- lane-dense output slab
    idx = idx_ref[...].astype(jnp.int32)
    rows, n_pack = idx.shape
    n_cols = tab_ref.shape[0]
    col_iota = jax.lax.broadcasted_iota(jnp.int32, (rows, n_cols), 1)

    # Multi-hot build: one broadcast-compare per packed column (the per-feature /
    # per-packed-edge offsets were folded into the indices in the wrapper), then
    # a balanced OR tree so compares and ORs can co-issue across the 4 VALUs.
    # Column bands are disjoint within a row, so OR == sum.
    hits = [col_iota == idx[:, q:q + 1] for q in range(n_pack)]
    while len(hits) > 1:
        nxt = []
        for a in range(0, len(hits) - 1, 2):
            nxt.append(jnp.logical_or(hits[a], hits[a + 1]))
        if len(hits) % 2:
            nxt.append(hits[-1])
        hits = nxt
    multihot = hits[0].astype(jnp.float32)

    # Gather + feature-sum as a single MXU matmul against the resident table.
    out_ref[...] = jnp.dot(multihot, tab_ref[...],
                           preferred_element_type=jnp.float32)


def edge_encoder_forward(edge_attr, tables, feature_dims, *, tile_edges=None):
    """edge_attr: (E, F) int array.  tables: list of (dim_i, H) float32 arrays."""
    E, F = edge_attr.shape
    assert F == len(feature_dims)
    H = int(tables[0].shape[1])
    D = int(sum(feature_dims))

    # Lane-packing factor: P consecutive edges per 128-lane output row.
    P = 128 // H if (H <= 128 and 128 % H == 0) else 1

    # Narrow index dtype: the idx block lane-pads (rows, P*F) -> (rows, 128), so
    # fewer bytes per element directly shrinks the idx double-buffers / DMA.
    max_packed = P * D - 1
    if max_packed <= 127:
        idx_dtype, idx_bytes = jnp.int8, 1
    elif max_packed <= 32767:
        idx_dtype, idx_bytes = jnp.int16, 2
    else:
        idx_dtype, idx_bytes = jnp.int32, 4

    lane = 128
    out_lanes = _round_up(P * H, lane)
    ncols_pad = _round_up(P * D, lane)
    tab_rows = _round_up(P * D, 8)

    # Per-slab-row VMEM cost: double-buffered out + idx (both lane-padded) plus
    # in-kernel intermediates (iota, masks, multihot), all ~(rows, 128)-shaped.
    per_row_bytes = (2 * out_lanes * 4          # out double buffer
                     + 2 * lane * idx_bytes     # idx double buffer (lane-padded)
                     + 4 * ncols_pad * 4)       # col_iota + multihot + mask temps
    tab_bytes = 2 * tab_rows * out_lanes * 4    # resident block-diag table

    vmem_cap = _vmem_capacity_bytes()

    # Edge tile: multiple of 32*P (narrow-int sublane tile / (8,128) rule), as
    # large as ~55% of VMEM allows, capped at 32K edges (past that the per-step
    # pipeline overhead is already <1%); tiles are balanced against E so the
    # zero-padded tail stays small.
    unit = 32 * P
    if tile_edges is None:
        budget = max(per_row_bytes, int(0.55 * vmem_cap) - tab_bytes)
        rows_fit = max(32, budget // per_row_bytes)
        tile_cap = max(unit, (min(rows_fit * P, 32768) // unit) * unit)
        n_tiles = max(1, _cdiv(E, tile_cap))
        tile_edges = _round_up(_cdiv(E, n_tiles), unit)
    tile_edges = max(unit, (min(int(tile_edges), _round_up(E, unit)) // unit) * unit)
    Ep = _round_up(E, tile_edges)
    num_tiles = Ep // tile_edges
    rows = tile_edges // P                      # output-slab rows per tile

    # Compile-time per-feature offsets (numpy, not traced).
    off = np.concatenate([[0], np.cumsum(np.asarray(feature_dims, dtype=np.int64))[:-1]])
    # Packed idx layout: column q = j*F + f holds edge (P*r + j), feature f;
    # the offsets (j*D + off[f]) are pre-added here so the kernel only compares.
    col_offsets = np.asarray([j * D + int(off[f]) for j in range(P) for f in range(F)],
                             dtype=np.int64)

    dims = jnp.asarray(feature_dims, dtype=jnp.int32)
    idx = jnp.clip(edge_attr.astype(jnp.int32), 0, dims - 1)     # keep in-vocab
    if Ep != E:
        idx = jnp.pad(idx, ((0, Ep - E), (0, 0)))                # pad rows use index 0
    idx_slab = (idx.reshape(Ep // P, P * F)
                + jnp.asarray(col_offsets, jnp.int32)[None, :]).astype(idx_dtype)

    # Block-diagonal RHS: P copies of the concatenated (D, H) table on the diagonal.
    tab_concat = jnp.concatenate([t.astype(jnp.float32) for t in tables], axis=0)
    tab_bd = jnp.kron(jnp.eye(P, dtype=jnp.float32), tab_concat)    # (P*D, P*H)

    tile_bytes = rows * per_row_bytes + tab_bytes
    vmem_limit = int(min(int(0.9 * vmem_cap),
                         max(8 * 1024 * 1024, int(1.5 * tile_bytes))))

    cost = pl.CostEstimate(
        flops=2 * Ep * (P * D) * H,
        transcendentals=0,
        bytes_accessed=Ep * F * idx_bytes + Ep * H * 4 + (P * D) * (P * H) * 4)

    out_slab = pl.pallas_call(
        _edge_encoder_kernel,
        out_shape=jax.ShapeDtypeStruct((Ep // P, P * H), jnp.float32),
        grid=(num_tiles,),
        in_specs=[
            pl.BlockSpec((rows, P * F), lambda i: (i, 0)),    # packed edge indices
            pl.BlockSpec((P * D, P * H), lambda i: (0, 0)),   # resident block-diag table
        ],
        out_specs=pl.BlockSpec((rows, P * H), lambda i: (i, 0)),
        compiler_params=pltpu.CompilerParams(
            # TODO(synk): on v7x verify the single "parallel" axis shards across
            # both TensorCores; if not, switch to pltpu.CORE_PARALLEL / core_map.
            dimension_semantics=("parallel",),
            vmem_limit_bytes=vmem_limit),
        cost_estimate=cost,
    )(idx_slab, tab_bd)

    # (Ep//P, P*H) row-major is byte-identical to (Ep, H): free reshape + slice.
    return out_slab.reshape(Ep, H)[:E]


def init_edge_encoder_params(key, emb_dim, feature_dims):
    """Xavier-uniform init for each embedding table, matching nn.init.xavier_uniform_."""
    tables = []
    for i, dim in enumerate(feature_dims):
        k = jax.random.fold_in(key, i)
        bound = (6.0 / (dim + emb_dim)) ** 0.5
        tables.append(
            jax.random.uniform(k, (dim, emb_dim), jnp.float32, -bound, bound))
    return tables


if __name__ == "__main__":
    key = jax.random.PRNGKey(0)

    # Small synthetic config (analogous to OGB bond feature dims).
    feature_dims = (5, 6, 2)
    emb_dim = 32
    num_edges = 8

    tables = init_edge_encoder_params(key, emb_dim, feature_dims)

    # Deterministic integer edge attributes, each column within its vocab.
    cols = []
    for i, dim in enumerate(feature_dims):
        kc = jax.random.fold_in(jax.random.PRNGKey(0), 100 + i)
        cols.append(jax.random.randint(kc, (num_edges, 1), 0, dim, jnp.int32))
    edge_attr = jnp.concatenate(cols, axis=1)       # (E, F) int32

    out = edge_encoder_forward(edge_attr, tables, feature_dims)
    out = jax.block_until_ready(out)

    # Pure-JAX reference (sum of embedding lookups) for a sanity check.
    ref = sum(tables[i][edge_attr[:, i]] for i in range(len(feature_dims)))
    assert out.shape == (num_edges, emb_dim)
    assert jnp.allclose(out, ref, atol=1e-5, rtol=1e-5)

    print("KERNEL_OK")
</pallas_src>

<mosaic_0001>
module attributes {stable_mosaic.version = 11 : i64} {
  func.func @_edge_encoder_kernel(%arg0: i32, %arg1: memref<32x12xi8, #tpu.memory_space<vmem>>, %arg2: memref<52x128xf32, #tpu.memory_space<vmem>>, %arg3: memref<32x128xf32, #tpu.memory_space<vmem>>) attributes {dimension_semantics = [#tpu.dimension_semantics<parallel>], iteration_bounds = array<i64: 1>, scalar_prefetch = 0 : i64, scratch_operands = 0 : i64, tpu.core_type = #tpu.core_type<tc>, window_params = [{transform_indices = @transform_0, window_bounds = array<i64: 32, 12>}, {pipeline_mode = #tpu.pipeline_mode<synchronous>, transform_indices = @transform_1, window_bounds = array<i64: 52, 128>}, {transform_indices = @transform_2, window_bounds = array<i64: 32, 128>}]} {
    %c0 = arith.constant 0 : index
    %c0_0 = arith.constant 0 : index
    %0 = vector.load %arg1[%c0, %c0_0] : memref<32x12xi8, #tpu.memory_space<vmem>>, vector<32x12xi8>
    %1 = arith.extsi %0 : vector<32x12xi8> to vector<32x12xi32>
    %2 = tpu.iota {dimensions = array<i32: 1>} : vector<32x52xi32>
    %3 = vector.extract_strided_slice %1 {offsets = [0, 0], sizes = [32, 1], strides = [1, 1]} : vector<32x12xi32> to vector<32x1xi32>
    %4 = vector.broadcast %3 : vector<32x1xi32> to vector<32x52xi32>
    %5 = arith.cmpi eq, %2, %4 : vector<32x52xi32>
    %6 = vector.extract_strided_slice %1 {offsets = [0, 1], sizes = [32, 1], strides = [1, 1]} : vector<32x12xi32> to vector<32x1xi32>
    %7 = vector.broadcast %6 : vector<32x1xi32> to vector<32x52xi32>
    %8 = arith.cmpi eq, %2, %7 : vector<32x52xi32>
    %9 = vector.extract_strided_slice %1 {offsets = [0, 2], sizes = [32, 1], strides = [1, 1]} : vector<32x12xi32> to vector<32x1xi32>
    %10 = vector.broadcast %9 : vector<32x1xi32> to vector<32x52xi32>
    %11 = arith.cmpi eq, %2, %10 : vector<32x52xi32>
    %12 = vector.extract_strided_slice %1 {offsets = [0, 3], sizes = [32, 1], strides = [1, 1]} : vector<32x12xi32> to vector<32x1xi32>
    %13 = vector.broadcast %12 : vector<32x1xi32> to vector<32x52xi32>
    %14 = arith.cmpi eq, %2, %13 : vector<32x52xi32>
    %15 = vector.extract_strided_slice %1 {offsets = [0, 4], sizes = [32, 1], strides = [1, 1]} : vector<32x12xi32> to vector<32x1xi32>
    %16 = vector.broadcast %15 : vector<32x1xi32> to vector<32x52xi32>
    %17 = arith.cmpi eq, %2, %16 : vector<32x52xi32>
    %18 = vector.extract_strided_slice %1 {offsets = [0, 5], sizes = [32, 1], strides = [1, 1]} : vector<32x12xi32> to vector<32x1xi32>
    %19 = vector.broadcast %18 : vector<32x1xi32> to vector<32x52xi32>
    %20 = arith.cmpi eq, %2, %19 : vector<32x52xi32>
    %21 = vector.extract_strided_slice %1 {offsets = [0, 6], sizes = [32, 1], strides = [1, 1]} : vector<32x12xi32> to vector<32x1xi32>
    %22 = vector.broadcast %21 : vector<32x1xi32> to vector<32x52xi32>
    %23 = arith.cmpi eq, %2, %22 : vector<32x52xi32>
    %24 = vector.extract_strided_slice %1 {offsets = [0, 7], sizes = [32, 1], strides = [1, 1]} : vector<32x12xi32> to vector<32x1xi32>
    %25 = vector.broadcast %24 : vector<32x1xi32> to vector<32x52xi32>
    %26 = arith.cmpi eq, %2, %25 : vector<32x52xi32>
    %27 = vector.extract_strided_slice %1 {offsets = [0, 8], sizes = [32, 1], strides = [1, 1]} : vector<32x12xi32> to vector<32x1xi32>
    %28 = vector.broadcast %27 : vector<32x1xi32> to vector<32x52xi32>
    %29 = arith.cmpi eq, %2, %28 : vector<32x52xi32>
    %30 = vector.extract_strided_slice %1 {offsets = [0, 9], sizes = [32, 1], strides = [1, 1]} : vector<32x12xi32> to vector<32x1xi32>
    %31 = vector.broadcast %30 : vector<32x1xi32> to vector<32x52xi32>
    %32 = arith.cmpi eq, %2, %31 : vector<32x52xi32>
    %33 = vector.extract_strided_slice %1 {offsets = [0, 10], sizes = [32, 1], strides = [1, 1]} : vector<32x12xi32> to vector<32x1xi32>
    %34 = vector.broadcast %33 : vector<32x1xi32> to vector<32x52xi32>
    %35 = arith.cmpi eq, %2, %34 : vector<32x52xi32>
    %36 = vector.extract_strided_slice %1 {offsets = [0, 11], sizes = [32, 1], strides = [1, 1]} : vector<32x12xi32> to vector<32x1xi32>
    %37 = vector.broadcast %36 : vector<32x1xi32> to vector<32x52xi32>
    %38 = arith.cmpi eq, %2, %37 : vector<32x52xi32>
    %39 = arith.ori %5, %8 : vector<32x52xi1>
    %40 = arith.ori %11, %14 : vector<32x52xi1>
    %41 = arith.ori %17, %20 : vector<32x52xi1>
    %42 = arith.ori %23, %26 : vector<32x52xi1>
    %43 = arith.ori %29, %32 : vector<32x52xi1>
    %44 = arith.ori %35, %38 : vector<32x52xi1>
    %45 = arith.ori %39, %40 : vector<32x52xi1>
    %46 = arith.ori %41, %42 : vector<32x52xi1>
    %47 = arith.ori %43, %44 : vector<32x52xi1>
    %48 = arith.ori %45, %46 : vector<32x52xi1>
    %49 = arith.ori %48, %47 : vector<32x52xi1>
    %50 = arith.extui %49 : vector<32x52xi1> to vector<32x52xi32>
    %51 = arith.sitofp %50 : vector<32x52xi32> to vector<32x52xf32>
    %c0_1 = arith.constant 0 : index
    %c0_2 = arith.constant 0 : index
    %52 = vector.load %arg2[%c0_1, %c0_2] : memref<52x128xf32, #tpu.memory_space<vmem>>, vector<52x128xf32>
    %cst = arith.constant dense<0.000000e+00> : vector<32x128xf32>
    %53 = tpu.matmul %51, %52, %cst {dimension_numbers = #tpu.dot_dimension_numbers<[1], [0], [0], [1], [0, 0, 1, 1], [], []>} : vector<32x52xf32>, vector<52x128xf32>, vector<32x128xf32> -> vector<32x128xf32>
    %c0_3 = arith.constant 0 : index
    %c0_4 = arith.constant 0 : index
    %54 = vector.load %arg3[%c0_3, %c0_4] : memref<32x128xf32, #tpu.memory_space<vmem>>, vector<32x128xf32>
    tpu.vector_store %arg3[%c0_3, %c0_4], %53 {strides = array<i32>} : memref<32x128xf32, #tpu.memory_space<vmem>>, vector<32x128xf32>,
    return
  }
  func.func @transform_0(%arg0: i32) -> (i32, i32) {
    %c0_i32 = arith.constant 0 : i32
    %c0_i32_0 = arith.constant 0 : i32
    return %arg0, %c0_i32 : i32, i32
  }
  func.func @transform_1(%arg0: i32) -> (i32, i32) {
    %c0_i32 = arith.constant 0 : i32
    %c0_i32_0 = arith.constant 0 : i32
    %c0_i32_1 = arith.constant 0 : i32
    return %c0_i32, %c0_i32_0 : i32, i32
  }
  func.func @transform_2(%arg0: i32) -> (i32, i32) {
    %c0_i32 = arith.constant 0 : i32
    %c0_i32_0 = arith.constant 0 : i32
    return %arg0, %c0_i32 : i32, i32
  }
}

</mosaic_0001>

<bundles_post_ra>
// kernel: tpu_custom_call.1
= control target key start
LH: loop header
LB: loop body
LE: loop exit
PB: predicated region body
PF: predicated region fallthrough
CT: control target
= control target key end

     0   :  { %7 = vsyncpa [#allocation3], 0  ;;  %s777_s0 = inlined_call_operand.vmem [shape: s8[32,12], index: 0, kind: input, shape index: {}]   ;;  %s778_s1 = inlined_call_operand.hbm [shape: f32[52,128], index: 1, kind: input, shape index: {}]   ;;  %s779_s2 = inlined_call_operand.hbm [shape: f32[32,128], index: 2, kind: output, shape index: {}]  }
   0x1   :  { %8 = vsyncpa [#allocation4], 0  ;;  %s15_s11 = sshll.u32 %s778_s1, 4  ;;  %s506_s12 = smov [#allocation2]   ;;  %s16_s11 = int_to_ptr.hbm [resolvable:$true] %s15_s11 }
   0x2   :  { %s17_s13 = sshll.u32 %s506_s12, 4  ;;  %s507_s14 = smov 128   ;;  %s18_s13 = int_to_ptr.vmem [resolvable:$true] %s17_s13 }
   0x3   :  { %s508_s15 = smov 8  }
   0x4   :  { %23 = dma.hbm_to_vmem [thread:$0]  %s16_s11, 896, %s18_s13, [#allocation3], %s507_s14, %s507_s14, %s508_s15  }
   0x5   :  { %502 = dma.done.wait [#allocation3], 896  }
   0x6   :  { %503 = vsyncadd [#allocation3], 4294966400  ;;  %v509_v0 = vmov 1   ;;  %v510_v1 = vmov 0   ;;  %v396_v2 = vld [vmem:[%s777_s0] sm:$0xff]   ;;  %v511_v7 = vmov 2   ;;  %v36_v18 = vlaneseq }
   0x7   :  { %416 = vset.pattern.permute.xlu2 %v509_v0  ;;  %415 = vset.pattern.permute.xlu1 %v510_v1  ;;  %v547_v3 = vunpack.c.2.s8 %v396_v2  ;;  %v549_v4 = vunpack.c.0.s8 %v396_v2  ;;  %v554_v5 = vunpack.c.3.s8 %v396_v2  ;;  %v556_v6 = vunpack.c.1.s8 %v396_v2  ;;  %v288_v47 = vld [vmem:[#allocation2 + $0x30] sm:$0xf]  ;;  %v287_v49 = vld [vmem:[#allocation2 + $0x28] sm:$0xff]  ;;  %v286_v50 = vld [vmem:[#allocation2 + $0x20] sm:$0xff]  ;;  %s522_s0 = smov [#allocation5]   ;;  %s345_s20 = sshll.u32 %s779_s2, 4  ;;  %s346_s20 = int_to_ptr.hbm [resolvable:$true] %s345_s20 }
   0x8   :  { %414 = vset.pattern.permute.xlu0 %v510_v1  ;;  %v512_v8 = vmov 3   ;;  %v513_v9 = vmov 4   ;;  %v514_v10 = vmov 5   ;;  %v515_v11 = vmov 10   ;;  %v285_v52 = vld [vmem:[#allocation2 + $0x18] sm:$0xff]  ;;  %v284_v54 = vld [vmem:[#allocation2 + $0x10] sm:$0xff] }
   0x9   :  { %45 = vperm.xlu1 %415, %v547_v3   ;;  %55 = vperm.xlu2 %416, %v549_v4   ;;  %v516_v12 = vmov 6   ;;  %v517_v13 = vmov 8   ;;  %v518_v14 = vmov 7   ;;  %v519_v15 = vmov 9   ;;  %v283_v55 = vld [vmem:[#allocation2 + $0x8] sm:$0xff]  ;;  %v282_v56 = vld [vmem:[#allocation2] sm:$0xff] }
   0xa   :  { %39 = vperm.xlu0 %414, %v549_v4   ;;  %v520_v16 = vmov 11   ;;  %v593_v19 = vand.u32 127, %v36_v18  ;;  %v787_v25 = vmov 0  ;;  %v789_v28 = vmov 0  ;;  %s343_s1 = sshll.u32 %s522_s0, 4  ;;  %s344_s1 = int_to_ptr.vmem [resolvable:$true] %s343_s1 }
   0xb   :  { %v793_v35 = vmov 0  ;;  %v795_v38 = vmov 0  ;;  %v797_v41 = vmov 0  ;;  %v799_v42 = vmov 0 }
   0xc   :  { %v802_v2 = vmov 0 }
  0x11   :  { %48 = vperm.xlu1 %415, %v554_v5   ;;  %58 = vperm.xlu2 %416, %v556_v6  }
  0x12   :  { %42 = vperm.xlu0 %414, %v556_v6  }
  0x19   :  { %418 = vset.pattern.permute.xlu1 %v509_v0  ;;  %419 = vset.pattern.permute.xlu2 %v511_v7 }
  0x1a   :  { %417 = vset.pattern.permute.xlu0 %v509_v0  ;;  %64 = vperm.xlu1 %418, %v554_v5  }
  0x1b   :  { %71 = vperm.xlu2 %419, %v549_v4   ;;  %61 = vperm.xlu0 %417, %v547_v3  }
  0x22   :  { %420 = vset.pattern.permute.xlu1 %v511_v7 }
  0x23   :  { %77 = vperm.xlu2 %419, %v547_v3   ;;  %421 = vset.pattern.permute.xlu0 %v511_v7 }
  0x24   :  { %74 = vperm.xlu1 %420, %v556_v6   ;;  %80 = vperm.xlu0 %421, %v554_v5  }
  0x2b   :  { %423 = vset.pattern.permute.xlu2 %v512_v8 }
  0x2c   :  { %422 = vset.pattern.permute.xlu1 %v512_v8  ;;  %90 = vperm.xlu2 %423, %v556_v6  }
  0x2d   :  { %87 = vperm.xlu1 %422, %v549_v4   ;;  %424 = vset.pattern.permute.xlu0 %v513_v9 }
  0x2e   :  { %103 = vperm.xlu0 %424, %v549_v4  }
  0x34   :  { %96 = vperm.xlu2 %423, %v554_v5  }
  0x35   :  { %93 = vperm.xlu1 %422, %v547_v3  }
  0x36   :  { %428 = vset.pattern.permute.xlu0 %v514_v10 }
  0x37   :  { %128 = vperm.xlu0 %428, %v554_v5  }
  0x3c   :  { %426 = vset.pattern.permute.xlu2 %v513_v9 }
  0x3d   :  { %425 = vset.pattern.permute.xlu1 %v513_v9  ;;  %109 = vperm.xlu2 %426, %v547_v3  }
  0x3e   :  { %106 = vperm.xlu1 %425, %v556_v6  }
  0x3f   :  { %437 = vset.pattern.permute.xlu0 %v515_v11 }
  0x40   :  { %208 = vperm.xlu0 %437, %v554_v5  }
  0x45   :  { %427 = vset.pattern.permute.xlu2 %v514_v10 }
  0x46   :  { %112 = vperm.xlu1 %425, %v554_v5   ;;  %125 = vperm.xlu2 %427, %v547_v3  }
  0x48   :  { %442 = vset.pattern.permute.xlu0 %v516_v12 }
  0x49   :  { %135 = vperm.xlu0 %442, %v549_v4  }
  0x4e   :  { %429 = vset.pattern.permute.xlu1 %v516_v12  ;;  %430 = vset.pattern.permute.xlu2 %v516_v12 }
  0x4f   :  { %141 = vperm.xlu1 %429, %v547_v3   ;;  %144 = vperm.xlu2 %430, %v554_v5  }
  0x51   :  { %443 = vset.pattern.permute.xlu0 %v517_v13 }
  0x52   :  { %173 = vperm.xlu0 %443, %v547_v3  }
  0x57   :  { %431 = vset.pattern.permute.xlu1 %v518_v14  ;;  %432 = vset.pattern.permute.xlu2 %v518_v14 }
  0x58   :  { %157 = vperm.xlu1 %431, %v547_v3   ;;  %160 = vperm.xlu2 %432, %v554_v5  }
  0x5a   :  { %170 = vperm.xlu0 %443, %v556_v6  }
  0x60   :  { %433 = vset.pattern.permute.xlu1 %v517_v13  ;;  %434 = vset.pattern.permute.xlu2 %v519_v15 }
  0x61   :  { %176 = vperm.xlu1 %433, %v554_v5   ;;  %189 = vperm.xlu2 %434, %v547_v3  }
  0x62   :  { %452 = vset.pattern.permute.xlu0 %v520_v16 }
  0x63   :  { %v56_v17 = vpop.permute.xlu2 %55  ;;  %215 = vperm.xlu0 %452, %v549_v4  }
  0x64   :  { %vm66_vm1 = vcmp.eq.s32.totalorder %v593_v19, %v56_v17 }
  0x69   :  { %435 = vset.pattern.permute.xlu1 %v519_v15  ;;  %436 = vset.pattern.permute.xlu2 %v515_v11 }
  0x6a   :  { %192 = vperm.xlu1 %435, %v554_v5   ;;  %205 = vperm.xlu2 %436, %v547_v3  }
  0x6b   :  { %v59_v20 = vpop.permute.xlu2 %58 }
  0x6c   :  { %vm67_vm0 = vcmp.eq.s32.totalorder %v593_v19, %v59_v20 }
  0x72   :  { %438 = vset.pattern.permute.xlu1 %v520_v16  ;;  %439 = vset.pattern.permute.xlu2 %v520_v16 }
  0x73   :  { %221 = vperm.xlu1 %438, %v547_v3   ;;  %224 = vperm.xlu2 %439, %v554_v5  }
  0x75   :  { %v72_v21 = vpop.permute.xlu2 %71 }
  0x76   :  { %vm82_vm13 = vcmp.eq.s32.totalorder %v593_v19, %v72_v21 }
  0x7b   :  { %440 = vset.pattern.permute.xlu1 %v514_v10  ;;  %441 = vset.pattern.permute.xlu2 %v514_v10  ;;  %v46_v22 = vpop.permute.xlu1 %45 }
  0x7c   :  { %119 = vperm.xlu1 %440, %v549_v4   ;;  %122 = vperm.xlu2 %441, %v556_v6   ;;  %v40_v23 = vpop.permute.xlu0 %39 }
  0x7d   :  { %vm50_vm2 = vcmp.eq.s32.totalorder %v593_v19, %v40_v23  ;;  %v78_v24 = vpop.permute.xlu2 %77 }
  0x7e   :  { %vm604_vm3 = vmor %vm50_vm2, %vm66_vm1  ;;  %vm52_vm2 = vcmp.eq.s32.totalorder %v593_v19, %v46_v22 }
  0x7f   :  { %v788_v25 = vsel %vm604_vm3, 4294967295, %v787_v25 }
  0x83   :  { %v49_v26 = vpop.permute.xlu1 %48 }
  0x84   :  { %444 = vset.pattern.permute.xlu1 %v516_v12  ;;  %v43_v27 = vpop.permute.xlu0 %42  ;;  %445 = vset.pattern.permute.xlu2 %v518_v14  ;;  %vm53_vm7 = vcmp.eq.s32.totalorder %v593_v19, %v49_v26 }
  0x85   :  { %138 = vperm.xlu1 %444, %v556_v6   ;;  %vm51_vm4 = vcmp.eq.s32.totalorder %v593_v19, %v43_v27  ;;  %151 = vperm.xlu2 %445, %v549_v4  }
  0x86   :  { %vm613_vm5 = vmor %vm51_vm4, %vm67_vm0  ;;  %v91_v29 = vpop.permute.xlu2 %90  ;;  %vm84_vm4 = vcmp.eq.s32.totalorder %v593_v19, %v78_v24 }
  0x87   :  { %v790_v28 = vsel %vm613_vm5, 4294967295, %v789_v28  ;;  %vm99_vm6 = vcmp.eq.s32.totalorder %v593_v19, %v91_v29 }
  0x8c   :  { %v65_v30 = vpop.permute.xlu1 %64 }
  0x8d   :  { %vm69_vm8 = vcmp.eq.s32.totalorder %v593_v19, %v65_v30  ;;  %446 = vset.pattern.permute.xlu1 %v518_v14  ;;  %447 = vset.pattern.permute.xlu2 %v517_v13  ;;  %v62_v39 = vpop.permute.xlu0 %61 }
  0x8e   :  { %vm620_vm9 = vmor %vm53_vm7, %vm69_vm8  ;;  %154 = vperm.xlu1 %446, %v556_v6   ;;  %v625_v32 = vpop.permute.xlu2 %96  ;;  %167 = vperm.xlu2 %447, %v549_v4   ;;  %vm68_vm1 = vcmp.eq.s32.totalorder %v593_v19, %v62_v39 }
  0x96   :  { %v75_v33 = vpop.permute.xlu1 %74  ;;  %448 = vset.pattern.permute.xlu1 %v519_v15  ;;  %449 = vset.pattern.permute.xlu2 %v519_v15  ;;  %v81_v45 = vpop.permute.xlu0 %80 }
  0x97   :  { %vm83_vm10 = vcmp.eq.s32.totalorder %v593_v19, %v75_v33  ;;  %183 = vperm.xlu1 %448, %v549_v4   ;;  %v630_v34 = vpop.permute.xlu2 %109  ;;  %186 = vperm.xlu2 %449, %v556_v6   ;;  %vm85_vm12 = vcmp.eq.s32.totalorder %v593_v19, %v81_v45 }
  0x98   :  { %vm635_vm11 = vmor %vm83_vm10, %vm99_vm6 }
  0x99   :  { %v794_v35 = vsel %vm635_vm11, 4294967295, %v793_v35  ;;  %vm662_vm6 = vmor %vm52_vm2, %vm68_vm1 }
  0x9a   :  { %v798_v41 = vsel %vm662_vm6, 4294967295, %v797_v41 }
  0x9f   :  { %450 = vset.pattern.permute.xlu1 %v515_v11  ;;  %v88_v36 = vpop.permute.xlu1 %87  ;;  %451 = vset.pattern.permute.xlu2 %v515_v11 }
  0xa0   :  { %vm98_vm14 = vcmp.eq.s32.totalorder %v593_v19, %v88_v36  ;;  %199 = vperm.xlu1 %450, %v549_v4   ;;  %v648_v37 = vpop.permute.xlu2 %125  ;;  %202 = vperm.xlu2 %451, %v556_v6   ;;  %v681_v51 = vpop.permute.xlu0 %103 }
  0xa1   :  { %vm651_vm15 = vmor %vm82_vm13, %vm98_vm14  ;;  %vm302_vm14 = vcmask 1043456  }
  0xa2   :  { %v796_v38 = vsel %vm651_vm15, 4294967295, %v795_v38  ;;  %377 = vmatpush.msk.msra.mxu3 %vm302_vm14, %v288_v47  ;;  %376 = vmatpush.msk.msra.mxu2 %vm302_vm14, %v288_v47 }
  0xa3   :  { %362 = vmatpush.msk.msra.mxu0 %vm302_vm14, %v288_v47  ;;  %375 = vmatpush.msk.msra.mxu1 %vm302_vm14, %v288_v47  ;;  %vm101_vm14 = vcmp.eq.s32.totalorder %v593_v19, %v625_v32 }
  0xa4   :  { %380 = vmatpush.msra.mxu3 %v287_v49  ;;  %379 = vmatpush.msra.mxu2 %v287_v49  ;;  %vm237_vm13 = vmor %vm85_vm12, %vm101_vm14  ;;  %vm116_vm14 = vcmp.eq.s32.totalorder %v593_v19, %v630_v34 }
  0xa5   :  { %316 = vmatpush.msra.mxu0 %v287_v49  ;;  %378 = vmatpush.msra.mxu1 %v287_v49 }
  0xa6   :  { %383 = vmatpush.msra.mxu3 %v286_v50  ;;  %382 = vmatpush.msra.mxu2 %v286_v50 }
  0xa7   :  { %v94_v40 = vpop.permute.xlu1 %93  ;;  %317 = vmatpush.msra.mxu0 %v286_v50  ;;  %381 = vmatpush.msra.mxu1 %v286_v50 }
  0xa8   :  { %vm100_vm7 = vcmp.eq.s32.totalorder %v593_v19, %v94_v40  ;;  %453 = vset.pattern.permute.xlu1 %v520_v16  ;;  %386 = vmatpush.msra.mxu3 %v285_v52 }
  0xa9   :  { %vm668_vm8 = vmor %vm84_vm4, %vm100_vm7  ;;  %218 = vperm.xlu1 %453, %v556_v6   ;;  %v145_v43 = vpop.permute.xlu2 %144  ;;  %385 = vmatpush.msra.mxu2 %v285_v52  ;;  %v129_v58 = vpop.permute.xlu0 %128  ;;  %v521_v6 = vmov 0.0  }
  0xaa   :  { %v800_v42 = vsel %vm668_vm8, 4294967295, %v799_v42  ;;  %318 = vmatpush.msra.mxu0 %v285_v52  ;;  %384 = vmatpush.msra.mxu1 %v285_v52  ;;  %vm149_vm1 = vcmp.eq.s32.totalorder %v593_v19, %v145_v43  ;;  %vm133_vm7 = vcmp.eq.s32.totalorder %v593_v19, %v129_v58 }
  0xab   :  { %389 = vmatpush.msra.mxu3 %v284_v54  ;;  %388 = vmatpush.msra.mxu2 %v284_v54 }
  0xac   :  { %319 = vmatpush.msra.mxu0 %v284_v54  ;;  %387 = vmatpush.msra.mxu1 %v284_v54 }
  0xad   :  { %392 = vmatpush.msra.mxu3 %v283_v55  ;;  %391 = vmatpush.msra.mxu2 %v283_v55 }
  0xae   :  { %320 = vmatpush.msra.mxu0 %v283_v55  ;;  %390 = vmatpush.msra.mxu1 %v283_v55 }
  0xaf   :  { %395 = vmatpush.msra.mxu3 %v282_v56  ;;  %394 = vmatpush.msra.mxu2 %v282_v56 }
  0xb0   :  { %v677_v44 = vpop.permute.xlu1 %106  ;;  %321 = vmatpush.msra.mxu0 %v282_v56  ;;  %393 = vmatpush.msra.mxu1 %v282_v56 }
  0xb1   :  { %vm801_vm15 = vcmp.eq.s32.totalorder %v593_v19, %v677_v44 }
  0xb2   :  { %v161_v46 = vpop.permute.xlu2 %160  ;;  %v209_v61 = vpop.permute.xlu0 %208 }
  0xb3   :  { %vm165_vm2 = vcmp.eq.s32.totalorder %v593_v19, %v161_v46  ;;  %vm213_vm8 = vcmp.eq.s32.totalorder %v593_v19, %v209_v61 }
  0xb4   :  { %vm245_vm0 = vmor %vm149_vm1, %vm165_vm2 }
  0xb5   :  { %vm257_vm1 = vmor %vm620_vm9, %vm237_vm13  ;;  %vm132_vm9 = vcmp.eq.s32.totalorder %v593_v19, %v648_v37  ;;  %vm786_vm13 = vcmask 424960  }
  0xb8   :  { %v113_v48 = vpop.permute.xlu1 %112 }
  0xb9   :  { %vm117_vm4 = vcmp.eq.s32.totalorder %v593_v19, %v113_v48 }
  0xba   :  { %vm241_vm10 = vmor %vm117_vm4, %vm133_vm7 }
  0xbb   :  { %v683_v53 = vpop.permute.xlu2 %189  ;;  %v136_v0 = vpop.permute.xlu0 %135  ;;  %vm261_vm11 = vmor %vm241_vm10, %vm245_vm0 }
  0xbc   :  { %vm269_vm2 = vmor %vm257_vm1, %vm261_vm11  ;;  %vm196_vm1 = vcmp.eq.s32.totalorder %v593_v19, %v683_v53 }
  0xc1   :  { %v142_v57 = vpop.permute.xlu1 %141 }
  0xc2   :  { %vm148_vm0 = vcmp.eq.s32.totalorder %v593_v19, %v142_v57 }
  0xc4   :  { %v206_v59 = vpop.permute.xlu2 %205  ;;  %v174_v5 = vpop.permute.xlu0 %173 }
  0xca   :  { %v158_v60 = vpop.permute.xlu1 %157 }
  0xcb   :  { %vm164_vm12 = vcmp.eq.s32.totalorder %v593_v19, %v158_v60 }
  0xcc   :  { %vm706_vm4 = vmor %vm148_vm0, %vm164_vm12  ;;  %vm180_vm12 = vcmp.eq.s32.totalorder %v593_v19, %v174_v5  ;;  %v171_v16 = vpop.permute.xlu0 %170 }
  0xcd   :  { %v225_v62 = vpop.permute.xlu2 %224 }
  0xce   :  { %vm229_vm6 = vcmp.eq.s32.totalorder %v593_v19, %v225_v62 }
  0xcf   :  { %vm253_vm10 = vmor %vm213_vm8, %vm229_vm6 }
  0xd0   :  { %vm240_vm8 = vmor %vm116_vm14, %vm132_vm9 }
  0xd1   :  { %vm260_vm0 = vmor %vm240_vm8, %vm706_vm4  ;;  %vm809_vm4 = vcmask 424960  }
  0xd3   :  { %v177_v63 = vpop.permute.xlu1 %176 }
  0xd5   :  { %v216_v20 = vpop.permute.xlu0 %215 }
  0xd6   :  { %v123_v1 = vpop.permute.xlu2 %122 }
  0xd7   :  { %vm131_vm5 = vcmp.eq.s32.totalorder %v593_v19, %v123_v1 }
  0xd8   :  { %vm696_vm3 = vmor %vm801_vm15, %vm131_vm5  ;;  %vm181_vm5 = vcmp.eq.s32.totalorder %v593_v19, %v177_v63 }
  0xd9   :  { %v803_v2 = vsel %vm696_vm3, 4294967295, %v802_v2 }
  0xdc   :  { %v193_v3 = vpop.permute.xlu1 %192 }
  0xdd   :  { %vm197_vm15 = vcmp.eq.s32.totalorder %v593_v19, %v193_v3 }
  0xde   :  { %vm249_vm7 = vmor %vm181_vm5, %vm197_vm15  ;;  %vm212_vm5 = vcmp.eq.s32.totalorder %v593_v19, %v206_v59 }
  0xdf   :  { %vm265_vm11 = vmor %vm249_vm7, %vm253_vm10  ;;  %vm806_vm10 = vnez %v798_v41  ;;  %v152_v9 = vpop.permute.xlu2 %151 }
  0xe0   :  { %vm273_vm6 = vmor %vm269_vm2, %vm265_vm11  ;;  %vm807_vm2 = vnez %v800_v42  ;;  %vm162_vm8 = vcmp.eq.s32.totalorder %v593_v19, %v152_v9 }
  0xe1   :  { %v361_v7 = vsel %vm273_vm6, 1.0, %v521_v6  ;;  %vm248_vm15 = vmor %vm180_vm12, %vm196_vm1  ;;  %vm114_vm12 = vcmp.eq.s32.totalorder %v593_v19, %v681_v51 }
  0xe2   :  { %366 = vmatmul.msk.f32.vlgmr.msra.gmra.mxu3 %vm786_vm13, %v361_v7  ;;  %vm808_vm7 = vmor %vm806_vm10, %vm807_vm2  ;;  %vm146_vm13 = vcmp.eq.s32.totalorder %v593_v19, %v136_v0 }
  0xe3   :  { %vm268_vm14 = vmor %vm808_vm7, %vm260_vm0 }
  0xe4   :  { %vm242_vm1 = vmor %vm146_vm13, %vm162_vm8  ;;  %vm817_vm8 = vnez %v794_v35 }
  0xe5   :  { %v222_v8 = vpop.permute.xlu1 %221 }
  0xe6   :  { %vm228_vm9 = vcmp.eq.s32.totalorder %v593_v19, %v222_v8 }
  0xe7   :  { %vm252_vm11 = vmor %vm212_vm5, %vm228_vm9  ;;  %vm810_vm5 = vnez %v788_v25 }
  0xe8   :  { %vm264_vm6 = vmor %vm248_vm15, %vm252_vm11  ;;  %vm811_vm15 = vnez %v796_v38  ;;  %vm815_vm11 = vnez %v803_v2  ;;  %v168_v17 = vpop.permute.xlu2 %167 }
  0xe9   :  { %vm272_vm3 = vmor %vm268_vm14, %vm264_vm6 }
  0xea   :  { %v360_v10 = vsel %vm272_vm3, 1.0, %v521_v6  ;;  %vm812_vm3 = vmor %vm810_vm5, %vm811_vm15 }
  0xeb   :  { %365 = vmatmul.msk.f32.vlgmr.msra.gmra.mxu2 %vm809_vm4, %v360_v10  ;;  %vm816_vm4 = vnez %v790_v28 }
  0xee   :  { %v120_v11 = vpop.permute.xlu1 %119 }
  0xef   :  { %vm130_vm0 = vcmp.eq.s32.totalorder %v593_v19, %v120_v11 }
  0xf0   :  { %vm238_vm10 = vmor %vm114_vm12, %vm130_vm0  ;;  %vm178_vm0 = vcmp.eq.s32.totalorder %v593_v19, %v168_v17 }
  0xf1   :  { %vm258_vm2 = vmor %vm238_vm10, %vm242_vm1  ;;  %v187_v21 = vpop.permute.xlu2 %186 }
  0xf2   :  { %vm740_vm7 = vmor %vm812_vm3, %vm258_vm2  ;;  %vm226_vm2 = vcmp.eq.s32.totalorder %v593_v19, %v216_v20 }
  0xf3   :  { %vm818_vm1 = vmor %vm816_vm4, %vm817_vm8 }
  0xf7   :  { %v139_v13 = vpop.permute.xlu1 %138 }
  0xf8   :  { %vm147_vm13 = vcmp.eq.s32.totalorder %v593_v19, %v139_v13 }
  0xfa   :  { %v203_v24 = vpop.permute.xlu2 %202 }
  0xfb   :  { %vm211_vm4 = vcmp.eq.s32.totalorder %v593_v19, %v203_v24 }
 0x100   :  { %v155_v14 = vpop.permute.xlu1 %154 }
 0x101   :  { %vm163_vm14 = vcmp.eq.s32.totalorder %v593_v19, %v155_v14 }
 0x102   :  { %vm243_vm9 = vmor %vm147_vm13, %vm163_vm14 }
 0x103   :  { %vm259_vm6 = vmor %vm815_vm11, %vm243_vm9  ;;  %vm821_vm9 = vcmask 424960   ;;  %vm195_vm11 = vcmp.eq.s32.totalorder %v593_v19, %v187_v21 }
 0x104   :  { %vm753_vm12 = vmor %vm818_vm1, %vm259_vm6  ;;  %vm179_vm6 = vcmp.eq.s32.totalorder %v593_v19, %v171_v16 }
 0x105   :  { %vm247_vm8 = vmor %vm179_vm6, %vm195_vm11 }
 0x109   :  { %v184_v18 = vpop.permute.xlu1 %183 }
 0x10a   :  { %vm194_vm10 = vcmp.eq.s32.totalorder %v593_v19, %v184_v18 }
 0x10b   :  { %vm246_vm5 = vmor %vm178_vm0, %vm194_vm10 }
 0x112   :  { %v200_v22 = vpop.permute.xlu1 %199 }
 0x113   :  { %vm210_vm15 = vcmp.eq.s32.totalorder %v593_v19, %v200_v22 }
 0x114   :  { %vm250_vm3 = vmor %vm210_vm15, %vm226_vm2 }
 0x115   :  { %vm262_vm13 = vmor %vm246_vm5, %vm250_vm3 }
 0x116   :  { %vm270_vm14 = vmor %vm740_vm7, %vm262_vm13 }
 0x117   :  { %v358_v23 = vsel %vm270_vm14, 1.0, %v521_v6  ;;  %vm822_vm7 = vmmov %vm821_vm9 }
 0x118   :  { %363 = vmatmul.msk.f32.vlgmr.msra.gmra.mxu0 %vm821_vm9, %v358_v23 }
 0x11b   :  { %v219_v25 = vpop.permute.xlu1 %218 }
 0x11c   :  { %vm227_vm1 = vcmp.eq.s32.totalorder %v593_v19, %v219_v25 }
 0x11d   :  { %vm251_vm0 = vmor %vm211_vm4, %vm227_vm1 }
 0x11e   :  { %vm263_vm10 = vmor %vm247_vm8, %vm251_vm0 }
 0x11f   :  { %vm271_vm2 = vmor %vm753_vm12, %vm263_vm10 }
 0x120   :  { %v359_v26 = vsel %vm271_vm2, 1.0, %v521_v6 }
 0x121   :  { %364 = vmatmul.msk.f32.vlgmr.msra.gmra.mxu1 %vm822_vm7, %v359_v26 }
 0x165   :  { %v332_v27 = vpop.f32.mrf.mxu3 }
 0x166   :  { %338 = vst [vmem:[#allocation5 + $0x18] sm:$0xff] %v332_v27 }
 0x16e   :  { %v329_v28 = vpop.f32.mrf.mxu2 }
 0x16f   :  { %337 = vst [vmem:[#allocation5 + $0x10] sm:$0xff] %v329_v28 }
 0x195   :  { %v323_v29 = vpop.f32.mrf.mxu0 }
 0x196   :  { %335 = vst [vmem:[#allocation5] sm:$0xff] %v323_v29 }
 0x19e   :  { %v326_v19 = vpop.f32.mrf.mxu1 }
 0x19f   :  { %336 = vst [vmem:[#allocation5 + $0x8] sm:$0xff] %v326_v19 }
 0x1a0   :  { %351 = dma.vmem_to_hbm [thread:$0]  %s344_s1, 512, %s346_s20, [#allocation4], %s507_s14, %s507_s14, %s508_s15  }
 0x1a1   :  { %504 = dma.done.wait [#allocation4], 512  }
 0x1a2   :  { %505 = vsyncadd [#allocation4], 4294966784 }
 0x1a3   :  { %356 = vsyncpa [#allocation3], 1 }
 0x1a4   :  { %357 = vsyncpa [#allocation4], 1 }

</bundles_post_ra>
